<compile_context>
chip_gen: v7x
topology: tpu7x:2x2x1
jax: 0.10.0
libtpu: 0.0.40
codegen_flags: <defaults>
</compile_context>

<pallas_src>
import jax
import jax.numpy as jnp
from jax import lax
from jax.experimental import pallas as pl
from jax.experimental.pallas import tpu as pltpu


def _round_up(x, m):
    return ((x + m - 1) // m) * m


def _default_max_tile():
    """512 on 128 MiB-VMEM chips (v5e/v6e), 256 on 64 MiB chips (v7x)."""
    try:
        info = pltpu.get_tpu_info()
        vmem_bytes = int(getattr(info, "vmem_capacity_bytes", 64 << 20))
    except Exception:
        vmem_bytes = 64 << 20
    return 512 if vmem_bytes >= (128 << 20) else 256


def _biaffine_kernel(rh_ref, rd_ref, u_ref, o_ref, t_ref):
    # rh_ref: (Bt, TQ, Dp)   rd_ref: (Bt, TK, Dp)   u_ref: (Dp, Dp)
    # o_ref : (Bt, TQ, TK)   t_ref : (Bt, TQ, Dp) f32 scratch (cached T)
    ki = pl.program_id(3)

    # Recompute T = Rh @ U only when the key-tile index resets to 0.
    @pl.when(ki == 0)
    def _():
        bt, tq, dp = rh_ref.shape
        rh2 = rh_ref[...].reshape(bt * tq, dp)            # fill MXU M dim
        t = jnp.dot(rh2, u_ref[...], preferred_element_type=jnp.float32)
        t_ref[...] = t.reshape(bt, tq, dp)

    # S_tile = T @ Rd_tile^T, expressed as a last-axis contraction (no .T).
    s = lax.dot_general(
        t_ref[...].astype(rd_ref.dtype), rd_ref[...],
        dimension_numbers=(((2,), (2,)), ((0,), (0,))),
        preferred_element_type=jnp.float32)               # (Bt, TQ, TK)
    o_ref[...] = s.astype(o_ref.dtype)


def biaffine_pallas(Rh, Rd, U, *, bias_head=True, bias_dep=True,
                    compute_dtype=None, max_tile=None, batch_block=None):
    """Forward pass of the Biaffine module using a Pallas TPU kernel."""
    B, L, D = Rh.shape
    assert Rd.shape == (B, L, D)
    C, Dh_full, Dd_full = U.shape
    assert Dh_full == D + int(bias_head) and Dd_full == D + int(bias_dep)

    if compute_dtype is None:
        compute_dtype = Rh.dtype
    compute_dtype = jnp.dtype(compute_dtype)

    # ---------- tile selection ----------
    if max_tile is None:
        max_tile = _default_max_tile()
    if L <= max_tile:
        TQ = TK = _round_up(L, 8)
    else:
        TQ = TK = max_tile
    Lp = _round_up(L, TQ)
    nQ, nK = Lp // TQ, Lp // TK

    # Fold several batch rows per grid step when TQ is small (fills the MXU).
    if batch_block is None:
        batch_block = max(1, min(B, 256 // TQ))
        while B % batch_block != 0:
            batch_block -= 1
    Bt = batch_block
    nB = B // Bt

    # ---------- pad feature dims to a 128 multiple; bias column inside pad ----
    Dp = _round_up(max(Dh_full, Dd_full), 128)

    Rh_p = jnp.zeros((B, Lp, Dp), compute_dtype).at[:, :L, :D].set(
        Rh.astype(compute_dtype))
    if bias_head:
        Rh_p = Rh_p.at[:, :L, D].set(1.0)
    Rd_p = jnp.zeros((B, Lp, Dp), compute_dtype).at[:, :L, :D].set(
        Rd.astype(compute_dtype))
    if bias_dep:
        Rd_p = Rd_p.at[:, :L, D].set(1.0)
    U_p = jnp.zeros((C, Dp, Dp), compute_dtype).at[:, :Dh_full, :Dd_full].set(
        U.astype(compute_dtype))

    # ---------- cost / vmem hints ----------
    itemsize = compute_dtype.itemsize
    flops = 2 * B * C * Lp * Dp * Dp + 2 * B * C * Lp * Lp * Dp
    bytes_accessed = ((Rh_p.size + Rd_p.size + U_p.size) * itemsize
                      + B * C * Lp * Lp * 4)
    blk_in = (Bt * TQ * Dp + Bt * TK * Dp + Dp * Dp) * itemsize
    blk_out = Bt * TQ * TK * 4
    scratch_bytes = Bt * TQ * Dp * 4
    needed = 2 * (blk_in + blk_out) + scratch_bytes
    vmem_limit = int(min(64 << 20, max(32 << 20, 2 * needed)))

    out = pl.pallas_call(
        _biaffine_kernel,
        out_shape=jax.ShapeDtypeStruct((B, C, Lp, Lp), jnp.float32),
        grid_spec=pltpu.PrefetchScalarGridSpec(
            num_scalar_prefetch=0,
            grid=(nB, C, nQ, nK),
            in_specs=[
                pl.BlockSpec((Bt, TQ, Dp), lambda b, c, q, k: (b, q, 0)),
                pl.BlockSpec((Bt, TK, Dp), lambda b, c, q, k: (b, k, 0)),
                pl.BlockSpec((None, Dp, Dp), lambda b, c, q, k: (c, 0, 0)),
            ],
            out_specs=pl.BlockSpec((Bt, None, TQ, TK),
                                   lambda b, c, q, k: (b, c, q, k)),
            scratch_shapes=[pltpu.VMEM((Bt, TQ, Dp), jnp.float32)],
        ),
        compiler_params=pltpu.CompilerParams(
            dimension_semantics=("parallel", "parallel", "parallel",
                                 "arbitrary"),
            vmem_limit_bytes=vmem_limit),
        cost_estimate=pl.CostEstimate(flops=int(flops), transcendentals=0,
                                      bytes_accessed=int(bytes_accessed)),
    )(Rh_p, Rd_p, U_p)

    if Lp != L:
        out = out[:, :, :L, :L]
    # torch's squeeze(1): only drops the channel dim when out_channels == 1
    if C == 1:
        out = out[:, 0]
    return out


def biaffine_reference(Rh, Rd, U, *, bias_head=True, bias_dep=True):
    """Pure-JAX reference matching the PyTorch forward exactly."""
    def add_ones_col(X):
        ones = jnp.ones((X.shape[0], X.shape[1], 1), dtype=X.dtype)
        return jnp.concatenate([X, ones], axis=-1)

    if bias_head:
        Rh = add_ones_col(Rh)
    if bias_dep:
        Rd = add_ones_col(Rd)
    S = jnp.einsum('blp,cpq,bmq->bclm', Rh, U, Rd)
    if U.shape[0] == 1:
        S = S[:, 0]
    return S


if __name__ == "__main__":
    # Small shapes consistent with the module: batch=2, seq=8, in_dim=32,
    # out_channels=4, both bias flags -> U is (4, 33, 33).
    batch, seq, in_dim, out_channels = 2, 8, 32, 4

    key = jax.random.PRNGKey(0)
    k_rh, k_rd, k_u = jax.random.split(key, 3)
    Rh = jax.random.normal(k_rh, (batch, seq, in_dim), dtype=jnp.float32)
    Rd = jax.random.normal(k_rd, (batch, seq, in_dim), dtype=jnp.float32)

    # reset_parameters() zeros U -> trivially zero output; use deterministic
    # random U of the module's parameter shape for a meaningful test.
    U = jax.random.normal(
        k_u, (out_channels, in_dim + 1, in_dim + 1), dtype=jnp.float32) * 0.1

    out = biaffine_pallas(Rh, Rd, U, bias_head=True, bias_dep=True)
    out = jax.block_until_ready(out)
    ref = biaffine_reference(Rh, Rd, U, bias_head=True, bias_dep=True)
    assert out.shape == (batch, out_channels, seq, seq), out.shape
    assert jnp.allclose(out, ref, atol=1e-4, rtol=1e-4), \
        f"max abs err = {jnp.max(jnp.abs(out - ref))}"

    # C == 1 squeeze path + asymmetric bias flags.
    U1 = jax.random.normal(k_u, (1, in_dim + 1, in_dim), jnp.float32) * 0.1
    out1 = jax.block_until_ready(
        biaffine_pallas(Rh, Rd, U1, bias_head=True, bias_dep=False))
    ref1 = biaffine_reference(Rh, Rd, U1, bias_head=True, bias_dep=False)
    assert out1.shape == (batch, seq, seq), out1.shape
    assert jnp.allclose(out1, ref1, atol=1e-4, rtol=1e-4), \
        f"max abs err = {jnp.max(jnp.abs(out1 - ref1))}"

    # bf16 compute path (v6e/v7x fast MXU path), f32 accumulation; loose tol.
    outb = jax.block_until_ready(
        biaffine_pallas(Rh, Rd, U, bias_head=True, bias_dep=True,
                        compute_dtype=jnp.bfloat16))
    assert jnp.allclose(outb, ref, atol=0.5, rtol=5e-2), \
        f"bf16 max abs err = {jnp.max(jnp.abs(outb - ref))}"

    print("KERNEL_OK")
</pallas_src>

<mosaic_0001>
module attributes {stable_mosaic.version = 11 : i64} {
  func.func @_biaffine_kernel(%arg0: i32, %arg1: i32, %arg2: i32, %arg3: i32, %arg4: memref<2x8x128xf32, #tpu.memory_space<vmem>>, %arg5: memref<2x8x128xf32, #tpu.memory_space<vmem>>, %arg6: memref<1x128x128xf32, #tpu.memory_space<vmem>>, %arg7: memref<2x1x8x8xf32, #tpu.memory_space<vmem>>, %arg8: memref<2x8x128xf32, #tpu.memory_space<vmem>>) attributes {dimension_semantics = [#tpu.dimension_semantics<parallel>, #tpu.dimension_semantics<parallel>, #tpu.dimension_semantics<parallel>, #tpu.dimension_semantics<arbitrary>], iteration_bounds = array<i64: 1, 4, 1, 1>, scalar_prefetch = 0 : i64, scratch_operands = 1 : i64, tpu.core_type = #tpu.core_type<tc>, window_params = [{transform_indices = @transform_0, window_bounds = array<i64: 2, 8, 128>}, {transform_indices = @transform_1, window_bounds = array<i64: 2, 8, 128>}, {transform_indices = @transform_2, window_bounds = array<i64: 1, 128, 128>}, {transform_indices = @transform_3, window_bounds = array<i64: 2, 1, 8, 8>}]} {
    %c0_i32 = arith.constant 0 : i32
    %0 = arith.cmpi eq, %arg3, %c0_i32 : i32
    %1 = arith.extui %0 : i1 to i32
    %c0_i32_0 = arith.constant 0 : i32
    %2 = arith.cmpi ne, %1, %c0_i32_0 : i32
    scf.if %2 {
      %c0_10 = arith.constant 0 : index
      %c0_11 = arith.constant 0 : index
      %c0_12 = arith.constant 0 : index
      %9 = vector.load %arg4[%c0_10, %c0_11, %c0_12] : memref<2x8x128xf32, #tpu.memory_space<vmem>>, vector<2x8x128xf32>
      %10 = vector.shape_cast %9 : vector<2x8x128xf32> to vector<16x128xf32>
      %c0_13 = arith.constant 0 : index
      %c0_14 = arith.constant 0 : index
      %c0_15 = arith.constant 0 : index
      %11 = vector.load %arg6[%c0_13, %c0_14, %c0_15] : memref<1x128x128xf32, #tpu.memory_space<vmem>>, vector<1x128x128xf32>
      %12 = vector.shape_cast %11 : vector<1x128x128xf32> to vector<128x128xf32>
      %cst_16 = arith.constant dense<0.000000e+00> : vector<16x128xf32>
      %13 = tpu.matmul %10, %12, %cst_16 {dimension_numbers = #tpu.dot_dimension_numbers<[1], [0], [0], [1], [0, 0, 1, 1], [], []>} : vector<16x128xf32>, vector<128x128xf32>, vector<16x128xf32> -> vector<16x128xf32>
      %14 = vector.shape_cast %13 : vector<16x128xf32> to vector<2x8x128xf32>
      %c0_17 = arith.constant 0 : index
      %c0_18 = arith.constant 0 : index
      %c0_19 = arith.constant 0 : index
      %15 = vector.load %arg8[%c0_17, %c0_18, %c0_19] : memref<2x8x128xf32, #tpu.memory_space<vmem>>, vector<2x8x128xf32>
      tpu.vector_store %arg8[%c0_17, %c0_18, %c0_19], %14 {strides = array<i32>} : memref<2x8x128xf32, #tpu.memory_space<vmem>>, vector<2x8x128xf32>,
    } else {
    }
    %c0 = arith.constant 0 : index
    %c0_1 = arith.constant 0 : index
    %c0_2 = arith.constant 0 : index
    %3 = vector.load %arg8[%c0, %c0_1, %c0_2] : memref<2x8x128xf32, #tpu.memory_space<vmem>>, vector<2x8x128xf32>
    %c0_3 = arith.constant 0 : index
    %c0_4 = arith.constant 0 : index
    %c0_5 = arith.constant 0 : index
    %4 = vector.load %arg5[%c0_3, %c0_4, %c0_5] : memref<2x8x128xf32, #tpu.memory_space<vmem>>, vector<2x8x128xf32>
    %cst = arith.constant dense<0.000000e+00> : vector<2x8x8xf32>
    %5 = tpu.matmul %3, %4, %cst {dimension_numbers = #tpu.dot_dimension_numbers<[2], [2], [1], [1], [0, 0, 0, 1, 1, 1], [0], [0]>} : vector<2x8x128xf32>, vector<2x8x128xf32>, vector<2x8x8xf32> -> vector<2x8x8xf32>
    %c0_6 = arith.constant 0 : index
    %c0_7 = arith.constant 0 : index
    %c0_8 = arith.constant 0 : index
    %c0_9 = arith.constant 0 : index
    %6 = vector.load %arg7[%c0_6, %c0_7, %c0_8, %c0_9] : memref<2x1x8x8xf32, #tpu.memory_space<vmem>>, vector<2x1x8x8xf32>
    %7 = vector.shape_cast %6 : vector<2x1x8x8xf32> to vector<2x8x8xf32>
    %8 = vector.shape_cast %5 : vector<2x8x8xf32> to vector<2x1x8x8xf32>
    tpu.vector_store %arg7[%c0_6, %c0_7, %c0_8, %c0_9], %8 {strides = array<i32>} : memref<2x1x8x8xf32, #tpu.memory_space<vmem>>, vector<2x1x8x8xf32>,
    return
  }
  func.func @transform_0(%arg0: i32, %arg1: i32, %arg2: i32, %arg3: i32) -> (i32, i32, i32) {
    %c0_i32 = arith.constant 0 : i32
    %c0_i32_0 = arith.constant 0 : i32
    return %arg0, %arg2, %c0_i32 : i32, i32, i32
  }
  func.func @transform_1(%arg0: i32, %arg1: i32, %arg2: i32, %arg3: i32) -> (i32, i32, i32) {
    %c0_i32 = arith.constant 0 : i32
    %c0_i32_0 = arith.constant 0 : i32
    return %arg0, %arg3, %c0_i32 : i32, i32, i32
  }
  func.func @transform_2(%arg0: i32, %arg1: i32, %arg2: i32, %arg3: i32) -> (i32, i32, i32) {
    %c0_i32 = arith.constant 0 : i32
    %c0_i32_0 = arith.constant 0 : i32
    %c0_i32_1 = arith.constant 0 : i32
    return %arg1, %c0_i32, %c0_i32_0 : i32, i32, i32
  }
  func.func @transform_3(%arg0: i32, %arg1: i32, %arg2: i32, %arg3: i32) -> (i32, i32, i32, i32) {
    %c0_i32 = arith.constant 0 : i32
    return %arg0, %arg1, %arg2, %arg3 : i32, i32, i32, i32
  }
}

</mosaic_0001>

<bundles_post_ra>
// kernel: tpu_custom_call.1
= control target key start
LH: loop header
LB: loop body
LE: loop exit
PB: predicated region body
PF: predicated region fallthrough
CT: control target
= control target key end

     0   :  { %8 = vsyncpa [#allocation4], 0  ;;  %s1356_s0 = inlined_call_operand.hbm [shape: f32[2,8,128], index: 0, kind: input, shape index: {}]   ;;  %s1357_s1 = inlined_call_operand.hbm [shape: f32[2,8,128], index: 1, kind: input, shape index: {}]   ;;  %s1358_s2 = inlined_call_operand.hbm [shape: f32[4,128,128], index: 2, kind: input, shape index: {}]   ;;  %s1359_s3 = inlined_call_operand.hbm [shape: f32[2,4,8,8], index: 3, kind: output, shape index: {}]  }
   0x1   :  { %9 = vsyncpa [#allocation7], 0 }
   0x2   :  { %10 = vsyncpa [#allocation5], 0 }
   0x3   :  { %12 = vsyncpa [#allocation5 + $0x1], 0  ;;  %s1072_s12 = smov 0   ;;  %s1074_s13 = smov 0  }
   0x4   :  { %s1076_s14 = smov 0   ;;  %s1078_s15 = smov 0  }
   0x5   :  { %s1080_s16 = smov 0   ;;  %s1082_s17 = smov 0  }
   0x6 LB: > { %s1103_s18 = sadd.s32 4294967295, %s1039_s17   ;;  %s656_s19 = sadd.s32 4294967294, %s1039_s17   ;;  %s1039_s17 = sphi %s1082_s17, %s18_s17   ;;  %s1035_s16 = sphi %s1080_s16, %s1383_s16   ;;  %s1031_s15 = sphi %s1078_s15, %s1382_s15   ;;  %s1027_s14 = sphi %s1076_s14, %s1381_s14   ;;  %s1023_s13 = sphi %s1074_s13, %s1380_s13   ;;  %s1019_s12 = sphi %s1072_s12, %s1379_s12  }
   0x7   : > { %p114_p0 = scmp.ne.s32.totalorder %s1027_s14, %s1023_s13  ;;  %p115_p1 = scmp.eq.s32.totalorder %s1039_s17, 0 }
   0x8   : > { %p120_p2 = scmp.ne.s32.totalorder %s1023_s13, %s1019_s12  ;;  %p1360_p3 = scmp.eq.s32.totalorder %s1103_s18, 0 }
   0x9   : > { %p1112_p4 = por %p115_p1, %p114_p0  ;;  %p150_p5 = scmp.eq.s32.totalorder %s1103_s18, 3 }
   0xa   : > { %p1119_p6 = por %p1360_p3, %p120_p2  ;;  %p156_p7 = scmp.eq.s32.totalorder %s656_s19, 3 }
   0xb   : > { %p1123_p8 = por %p150_p5, %p114_p0  ;;  %p657_p9 = scmp.ge.s32.totalorder %s1039_s17, 1 }
   0xc   : > { %s1365_s21 = scalar_select %p1119_p6, 1, 0 }
   0xd   : > { %s1366_s22 = scalar_select %p1123_p8, 1, 0 }
   0xe   : > { %p1128_p10 = por %p156_p7, %p120_p2  ;;  %p163_p11 = scmp.lt.s32.totalorder %s1039_s17, 5 }
   0xf   : > { %s1041_s25 = smov [#allocation3]   ;;  %p802_p0 = scmp.lt.s32.totalorder %s1039_s17, 4 }
  0x10   : > { %s1367_s23 = scalar_select %p1128_p10, 1, 0 }
  0x11   : > { %p1133_p12 = pnand %p657_p9, %p163_p11  ;;  %s179_s26 = sshll.u32 %s1041_s25, 4  ;;  %s1137_s26 = int_to_ptr.vmem [resolvable:$true] %s179_s26 }
  0x12   : > { %p1150_p2 = pnand %p802_p0, %p1112_p4  ;;  %s1042_s29 = smov [#allocation6]  }
  0x13   : > { %p785_p13 = pneg %p1133_p12  ;;  %s196_s30 = sshll.u32 %s1042_s29, 4  ;;  %s1154_s30 = int_to_ptr.vmem [resolvable:$true] %s196_s30 }
  0x14   : > { %s863_s6 = scalar_lea.hbm %s1356_s0, 256 }
  0x15   : > { %p1144_p1 = pnand %p785_p13, %p1360_p3  ;;  %p864_p5 = scmp.ne.s32.totalorder %s1356_s0, %s863_s6 }
  0x16   : > { %p870_p11 = scmp.lt.u32.totalorder %s863_s6, %s1356_s0 }
  0x17   : > { %p865_p7 = pneg %p1144_p1 }
  0x19   : > { %p866_p4 = pnand %p865_p7, %p864_p5 }
  0x1b   : > { %p867_p9 = pneg %p866_p4 }
  0x1d   : > { %p872_p13 = pnand %p870_p11, %p867_p9 }
  0x1f   : > { %875 = shalt.err (!%p872_p13)
}
  0x20   : > { %s876_s11 = scalar_lea.vmem %s1137_s26, 256  ;;  %p884_p8 = scmp.lt.s32.totalorder %s1137_s26, %s1137_s26 }
  0x21   : > { %p877_p0 = scmp.ne.s32.totalorder %s1137_s26, %s876_s11  ;;  %p885_p5 = scmp.lt.s32.totalorder %s876_s11, %s876_s11 }
  0x23   : > { %p879_p3 = pnand %p877_p0, %p865_p7  ;;  %p886_p4 = por %p885_p5, %p884_p8 }
  0x25   : > { %p880_p10 = pneg %p879_p3 }
  0x27   : > { %p887_p6 = pnand %p886_p4, %p880_p10 }
  0x29   : > { %890 = shalt.err (!%p887_p6)
}
  0x2a   : > { %s1363_s19 = smov 128   ;;  %s1044_s20 = smov 8  }
  0x2b   : > { %788 = dma.hbm_to_vmem [thread:$0]  (!%p1144_p1), %s1356_s0, 256, %s1137_s26, [#allocation4], %s1363_s19, %s1363_s19, %s1044_s20  }
  0x2c   : > { %s891_s6 = scalar_lea.hbm %s1357_s1, 256 }
  0x2d   : > { %p892_p3 = scmp.ne.s32.totalorder %s1357_s1, %s891_s6  ;;  %p898_p10 = scmp.lt.u32.totalorder %s891_s6, %s1357_s1 }
  0x2f   : > { %p894_p6 = pnand %p892_p3, %p865_p7 }
  0x31   : > { %p895_p8 = pneg %p894_p6 }
  0x33   : > { %p900_p9 = pnand %p898_p10, %p895_p8 }
  0x35   : > { %903 = shalt.err (!%p900_p9)
}
  0x36   : > { %s904_s26 = scalar_lea.vmem %s1154_s30, 256  ;;  %p912_p5 = scmp.lt.s32.totalorder %s1154_s30, %s1154_s30 }
  0x37   : > { %p905_p11 = scmp.ne.s32.totalorder %s1154_s30, %s904_s26  ;;  %p913_p4 = scmp.lt.s32.totalorder %s904_s26, %s904_s26 }
  0x39   : > { %p907_p13 = pnand %p905_p11, %p865_p7  ;;  %p914_p3 = por %p913_p4, %p912_p5 }
  0x3b   : > { %p908_p0 = pneg %p907_p13 }
  0x3d   : > { %p915_p6 = pnand %p914_p3, %p908_p0 }
  0x3f   : > { %918 = shalt.err (!%p915_p6)
}
  0x40   : > { %791 = dma.hbm_to_vmem [thread:$0]  (!%p1144_p1), %s1357_s1, 256, %s1154_s30, [#allocation7], %s1363_s19, %s1363_s19, %s1044_s20  }
  0x41   : > { %s107_s29 = sadd.s32 1, %s1027_s14  ;;  %s40_s4 = sadd.s32 1, %s1035_s16 }
  0x42   : > { %s210_s5 = sand.u32 1, %s1039_s17   ;;  %p42_p7 = scmp.ge.s32.totalorder %s40_s4, 4 }
  0x43   : > { %s212_s27 = sand.u32 1, %s1027_s14   ;;  %s673_s6 = sshll.u32 %s1035_s16, 11 }
  0x44   : > { %s1385_s4 = smov (%p42_p7, %s40_s4), 0  ;;  %s661_s7 = sshll.u32 %s212_s27, 7 }
  0x45   : > { %s1224_s10 = scalar_lea.hbm %s1358_s2, %s673_s6  ;;  %s104_s30 = ssub.s32 %s1035_s16, %s1385_s4 }
  0x46   : > { %p105_p1 = scmp.eq.s32.totalorder %s104_s30, 0  ;;  %s214_s26 = scalar_lea.vmem [#allocation8], %s661_s7 }
  0x47   : > { %s221_s11 = sshll.u32 %s214_s26, 4  ;;  %s1233_s19 = scalar_lea.sflag [#allocation4], %s210_s5  ;;  %s1228_s11 = int_to_ptr.vmem [resolvable:$true] %s221_s11 }
  0x48   : > { %s1231_s25 = scalar_select %p105_p1, %s1027_s14, %s107_s29  }
  0x49   : > { %s919_s27 = scalar_lea.hbm %s1224_s10, 2048  ;;  %p921_p10 = pneg %p1150_p2 }
  0x4a   : > { %p920_p8 = scmp.ne.s32.totalorder %s1224_s10, %s919_s27  ;;  %s924_s9 = scalar_lea.hbm %s1358_s2, 8192 }
  0x4b   : > { %p925_p13 = scmp.lt.u32.totalorder %s1224_s10, %s1358_s2  ;;  %p926_p0 = scmp.lt.u32.totalorder %s924_s9, %s919_s27 }
  0x4c   : > { %p922_p9 = pnand %p921_p10, %p920_p8  ;;  %p928_p4 = scmp.lt.u32.totalorder %s919_s27, %s1224_s10 }
  0x4d   : > { %p927_p5 = por %p926_p0, %p925_p13 }
  0x4e   : > { %p923_p11 = pneg %p922_p9 }
  0x4f   : > { %p929_p3 = por %p928_p4, %p927_p5 }
  0x51   : > { %p930_p6 = pnand %p929_p3, %p923_p11 }
  0x53   : > { %933 = shalt.err (!%p930_p6)
}
  0x54   : > { %s934_s29 = scalar_lea.vmem %s1228_s11, 2048  ;;  %s1045_s5 = smov [#allocation8]  }
  0x55   : > { %p935_p7 = scmp.ne.s32.totalorder %s1228_s11, %s934_s29  ;;  %s939_s26 = sshll.u32 %s1045_s5, 4  ;;  %s940_s26 = int_to_ptr.vmem [resolvable:$false] %s939_s26 }
  0x56   : > { %s941_s6 = scalar_lea.vmem %s940_s26, 4096  ;;  %p942_p9 = scmp.lt.s32.totalorder %s1228_s11, %s940_s26 }
  0x57   : > { %p937_p1 = pnand %p935_p7, %p921_p10  ;;  %p943_p13 = scmp.lt.s32.totalorder %s941_s6, %s934_s29 }
  0x59   : > { %p938_p8 = pneg %p937_p1  ;;  %p944_p0 = por %p943_p13, %p942_p9 }
  0x5b   : > { %p945_p5 = pnand %p944_p0, %p938_p8 }
  0x5d   : > { %948 = shalt.err (!%p945_p5)
}
  0x5e   : > { %s1371_s27 = smov 128   ;;  %233 = sbr.rel (%p1133_p12) target bundleno = 590 (0x24e), region = 32 }
  0x5f   : > { %795 = dma.hbm_to_vmem [thread:$0]  (!%p1150_p2), %s1224_s10, 2048, %s1228_s11, %s1233_s19, %s1371_s27, %s1371_s27, %s1044_s20  }
  0x60   : > { %p1372_p10 = scmp.eq.s32.totalorder (!%p1133_p12), %s1103_s18, 0 }
  0x65   : > { %1002 = dma.done.wait (%p1372_p10), [#allocation4], 256   ;;  %p1373_p11 = pmov %p1372_p10 }
  0x66   : > { %p1374_p4 = pmov %p1372_p10 }
  0x67   : > { %1004 = vsyncadd (%p1373_p11), [#allocation4], 4294967040 }
  0x68   : > { %1006 = dma.done.wait (%p1374_p4), [#allocation7], 256   ;;  %p1375_p3 = pmov %p1374_p4 }
  0x69   : > { %s243_s28 = sand.u32 1, %s1103_s18   ;;  %s1276_s19 = sand.u32 1, %s1023_s13  }
  0x6a   : > { %1008 = vsyncadd (%p1375_p3), [#allocation7], 4294967040  ;;  %s667_s24 = sshll.u32 %s1276_s19, 7  ;;  %s244_s20 = scalar_lea.sflag [#allocation4], %s243_s28 }
  0x6b   : > { %s1279_s10 = scalar_lea.vmem [#allocation8], %s667_s24  ;;  %p1376_p12 = scmp.ne.s32.totalorder %s1365_s21, 0 }
  0x6d   : > { %1010 = dma.done.wait (%p1376_p12), %s244_s20, 2048  }
  0x6e   : > { %1012 = vsyncadd (%p1376_p12), %s244_s20, 4294965248  ;;  %v1046_v0 = vmov 0.0   ;;  %v279_v1 = vld [vmem:[%s1279_s10] sm:$0xff]  ;;  %v280_v2 = vld [vmem:[%s1279_s10 + $0x8] sm:$0xff]  ;;  %vm1047_vm0 = vmmov 0   ;;  %s668_s18 = sshll.u32 %s1276_s19, 4 }
  0x6f   : > { %731 = vmatprep.subr.mxu1 %v1046_v0  ;;  %v281_v3 = vld [vmem:[%s1279_s10 + $0x10] sm:$0xff]  ;;  %v741_v4 = vpack.c.bf16 %v280_v2, %v279_v1  ;;  %v282_v5 = vld [vmem:[%s1279_s10 + $0x18] sm:$0xff]  ;;  %v283_v7 = vld [vmem:[%s1279_s10 + $0x20] sm:$0xff]  ;;  %733 = vmatprep.mubr.msk.f32.mxu1 %vm1047_vm0, %v1046_v0  ;;  %vm516_vm1 = vcmask 64512   ;;  %s269_s21 = scalar_lea.vmem [#allocation9], %s668_s18  ;;  %s670_s8 = sshll.u32 %s1031_s15, 7 }
  0x70   : > { %v745_v6 = vpack.c.bf16 %v282_v5, %v281_v3  ;;  %v284_v8 = vld [vmem:[%s1279_s10 + $0x28] sm:$0xff]  ;;  %v277_v10 = vld [vmem:[#allocation3] sm:$0xff]  ;;  %v285_v11 = vld [vmem:[%s1279_s10 + $0x30] sm:$0xff]  ;;  %s537_s11 = sshll.u32 %s269_s21, 4  ;;  %s1308_s30 = scalar_lea.hbm %s1359_s3, %s670_s8  ;;  %s1303_s11 = int_to_ptr.vmem [resolvable:$true] %s537_s11 }
  0x71   : > { %742 = vmatprep.subr.bf16.mxu0 %v741_v4  ;;  %v749_v9 = vpack.c.bf16 %v284_v8, %v283_v7  ;;  %v286_v12 = vld [vmem:[%s1279_s10 + $0x38] sm:$0xff]  ;;  %728 = vmatprep.mubr.f32.mxu0 %v277_v10  ;;  %v374_v13 = vld [vmem:[#allocation6] sm:$0xff]  ;;  %v287_v15 = vld [vmem:[%s1279_s10 + $0x40] sm:$0xff]  ;;  %s520_s29 = scalar_lea.sflag [#allocation5], %s1276_s19  ;;  %s949_s5 = scalar_lea.vmem %s1303_s11, 256 }
  0x72   : > { %744 = vmatpush3.bf16.msra.mxu0 %v741_v4  ;;  %732 = vmatpush3.xpose.msra.mxu1 %v374_v13  ;;  %v753_v14 = vpack.c.bf16 %v286_v12, %v285_v11  ;;  %v288_v16 = vld [vmem:[%s1279_s10 + $0x48] sm:$0xff]  ;;  %v289_v18 = vld [vmem:[%s1279_s10 + $0x50] sm:$0xff]  ;;  %v290_v19 = vld [vmem:[%s1279_s10 + $0x58] sm:$0xff]  ;;  %p950_p2 = scmp.ne.s32.totalorder %s1303_s11, %s949_s5  ;;  %p1377_p6 = scmp.ne.s32.totalorder %s1366_s22, 0 }
  0x73   : > { %746 = vmatprep.subr.bf16.mxu0 %v745_v6  ;;  %736 = vmatprep.subr.mxu1 %v1046_v0  ;;  %v757_v17 = vpack.c.bf16 %v288_v16, %v287_v15  ;;  %v761_v20 = vpack.c.bf16 %v290_v19, %v289_v18  ;;  %v291_v21 = vld [vmem:[%s1279_s10 + $0x60] sm:$0xff]  ;;  %v292_v22 = vld [vmem:[%s1279_s10 + $0x68] sm:$0xff]  ;;  %v293_v24 = vld [vmem:[%s1279_s10 + $0x70] sm:$0xff]  ;;  %s1048_s15 = smov [#allocation9]  }
  0x74   : > { %v765_v23 = vpack.c.bf16 %v292_v22, %v291_v21  ;;  %v294_v25 = vld [vmem:[%s1279_s10 + $0x78] sm:$0xff]  ;;  %v278_v27 = vld [vmem:[#allocation3 + $0x8] sm:$0xff]  ;;  %p951_p7 = pnand %p950_p2, %p1377_p6  ;;  %s953_s26 = sshll.u32 %s1048_s15, 4  ;;  %s954_s26 = int_to_ptr.vmem [resolvable:$false] %s953_s26 }
  0x75   : > { %v769_v26 = vpack.c.bf16 %v294_v25, %v293_v24  ;;  %v375_v29 = vld [vmem:[#allocation6 + $0x8] sm:$0xff]  ;;  %s955_s6 = scalar_lea.vmem %s954_s26, 512  ;;  %p956_p8 = scmp.lt.s32.totalorder %s1303_s11, %s954_s26 }
  0x76   : > { %748 = vmatpush3.bf16.msra.mxu0 %v745_v6  ;;  %p952_p1 = pneg %p951_p7  ;;  %p957_p9 = scmp.lt.s32.totalorder %s955_s6, %s949_s5 }
  0x77   : > { %750 = vmatprep.subr.bf16.mxu0 %v749_v9 }
  0x78   : > { %p958_p13 = por %p957_p9, %p956_p8 }
  0x7a   : > { %752 = vmatpush3.bf16.msra.mxu0 %v749_v9  ;;  %p959_p0 = pnand %p958_p13, %p952_p1 }
  0x7b   : > { %754 = vmatprep.subr.bf16.mxu0 %v753_v14 }
  0x7e   : > { %756 = vmatpush3.bf16.msra.mxu0 %v753_v14 }
  0x7f   : > { %758 = vmatprep.subr.bf16.mxu0 %v757_v17 }
  0x82   : > { %760 = vmatpush3.bf16.msra.mxu0 %v757_v17 }
  0x83   : > { %762 = vmatprep.subr.bf16.mxu0 %v761_v20 }
  0x86   : > { %764 = vmatpush3.bf16.msra.mxu0 %v761_v20 }
  0x87   : > { %766 = vmatprep.subr.bf16.mxu0 %v765_v23 }
  0x8a   : > { %768 = vmatpush3.bf16.msra.mxu0 %v765_v23 }
  0x8b   : > { %770 = vmatprep.subr.bf16.mxu0 %v769_v26 }
  0x8e   : > { %772 = vmatpush3.bf16.msra.mxu0 %v769_v26 }
  0x91   : > { %729 = vmatmul.mubr.f32.vlgmr.msra.gmra.mrb[0].mxu0 %v278_v27 }
 0x164   : > { %v730_v28 = vpop.f32.mrb[0].mxu0 }
 0x165   : > { %v361_v30 = vpop.f32.mrb[1].mxu0 }
 0x166   : > { %734 = vmatmul.mubr.f32.vlgmr.msra.gmra.mrb[0].mxu1 %v361_v30 }
 0x167   : > { %737 = vmatpush3.xpose.msra.mxu1 %v375_v29  ;;  %738 = vmatprep.mubr.msk.f32.mxu1 %vm1047_vm0, %v1046_v0 }
 0x16a   : > { %739 = vmatmul.mubr.f32.vlgmr.msra.gmra.mrb[2].mxu1 %v730_v28 }
 0x239   : > { %v442_v31 = vpop.f32.mrb[0].mxu1 }
 0x23a   : > { %517 = vst.msk [vmem:[%s269_s21] sm:$0xff] %vm516_vm1, %v442_v31  ;;  %v735_v32 = vpop.f32.mrb[1].mxu1 }
 0x23d   : > { %v512_v33 = vpop.f32.mrb[2].mxu1 }
 0x23e   : > { %518 = vst.msk [vmem:[%s269_s21 + $0x8] sm:$0xff] %vm516_vm1, %v512_v33  ;;  %v740_v34 = vpop.f32.mrb[3].mxu1 }
 0x23f   : > { %962 = shalt.err (!%p959_p0)
}
 0x240   : > { %s963_s27 = scalar_lea.hbm %s1308_s30, 256  ;;  %s967_s20 = scalar_lea.hbm %s1359_s3, 1024 }
 0x241   : > { %p964_p5 = scmp.ne.s32.totalorder %s1308_s30, %s963_s27  ;;  %p968_p4 = scmp.lt.u32.totalorder %s1308_s30, %s1359_s3 }
 0x242   : > { %p969_p3 = scmp.lt.u32.totalorder %s967_s20, %s963_s27  ;;  %p971_p2 = scmp.lt.u32.totalorder %s963_s27, %s1308_s30 }
 0x243   : > { %p965_p10 = pnand %p964_p5, %p1377_p6 }
 0x244   : > { %p970_p12 = por %p969_p3, %p968_p4 }
 0x245   : > { %p966_p11 = pneg %p965_p10 }
 0x246   : > { %p972_p7 = por %p971_p2, %p970_p12 }
 0x248   : > { %p973_p1 = pnand %p972_p7, %p966_p11 }
 0x24a   : > { %976 = shalt.err (!%p973_p1)
}
 0x24b   : > { %s1049_s21 = smov 128   ;;  %s1050_s8 = smov 512  }
 0x24c   : > { %s1051_s9 = smov 8  }
 0x24d   : > { %783 = dma.vmem_to_hbm [thread:$0]  (%p1377_p6), %s1303_s11, 256, %s1308_s30, %s520_s29, %s1049_s21, %s1050_s8, %s1051_s9  }
 0x24e PF: > { %p805_p8 = scmp.ge.s32.totalorder %s1039_s17, 2  ;;  %s552_s7 = sand.u32 1, %s1019_s12  }
 0x24f   : > { %p1378_p9 = scmp.ne.s32.totalorder %s1367_s23, 0  ;;  %s553_s5 = scalar_lea.sflag [#allocation5], %s552_s7 }
 0x251   : > { %p797_p13 = pnand %p805_p8, %p1378_p9 }
 0x253   : > { %1014 = dma.done.wait (!%p797_p13), %s553_s5, 256  }
 0x254   : > { %1016 = vsyncadd (!%p797_p13), %s553_s5, 4294967040  ;;  %s18_s17 = sadd.s32 1, %s1039_s17   ;;  %s1379_s12 = smov %s1023_s13 }
 0x255   : > { %p15_p0 = scmp.ge.s32.totalorder %s18_s17, 6   ;;  %s1380_s13 = smov %s1027_s14 }
 0x256   : > { %s1381_s14 = smov %s1231_s25  ;;  %s1382_s15 = smov %s1035_s16 }
 0x257   : > { %s1383_s16 = smov %s1385_s4  ;;  %17 = sbr.rel (!%p15_p0) target bundleno = 6 (0x6), region = 90 }
 0x25e   :  { %558 = vsyncpa [#allocation4], 1 }
 0x25f   :  { %560 = vsyncpa [#allocation4 + $0x1], 1 }
 0x260   :  { %561 = vsyncpa [#allocation7], 1 }
 0x261   :  { %562 = vsyncpa [#allocation5], 1 }
 0x262   :  { %564 = vsyncpa [#allocation5 + $0x1], 1 }

</bundles_post_ra>
